<compile_context>
chip_gen: v5e
topology: v5e:2x2
jax: 0.10.0
libtpu: 0.0.40
codegen_flags: <defaults>
</compile_context>

<pallas_src>
import math
from functools import partial

import jax
import jax.numpy as jnp
from jax.experimental import pallas as pl
from jax.experimental.pallas import tpu as pltpu


# ------------------------------- Pallas kernel -------------------------------
def mha_kernel(x_ref, wqkv_ref, wproj_ref, bproj_ref, o_ref, *, num_heads, seq_len):
    # x_ref: (B_blk*T, d_in) row slab; weights fully resident in VMEM.
    x = x_ref[...]                                  # keep input dtype for MXU
    w_qkv = wqkv_ref[...]                           # (d_in, 3*d_out), Q cols pre-scaled
    w_proj = wproj_ref[...]                         # (d_out, d_out)
    b_proj = bproj_ref[...].astype(jnp.float32)     # (1, d_out)

    rows = x.shape[0]
    d_out = w_proj.shape[0]
    head_dim = d_out // num_heads
    T = seq_len
    n_batches = rows // T

    # Fused QKV projection for all batches/heads in this block (f32 accumulate).
    qkv = jnp.dot(x, w_qkv, preferred_element_type=jnp.float32)   # (rows, 3*d_out)

    # Causal mask shared by all (batch, head) tiles; large finite negative
    # instead of -inf (robust, same softmax result since diagonal is unmasked).
    row_i = jax.lax.broadcasted_iota(jnp.int32, (T, T), 0)
    col_i = jax.lax.broadcasted_iota(jnp.int32, (T, T), 1)
    causal = col_i <= row_i
    neg = jnp.float32(-1e30)

    # q @ k.T without materializing a transpose: contract the last dims.
    dn = (((1,), (1,)), ((), ()))

    for b in range(n_batches):                      # static, unrolled
        r0 = b * T
        acc = jnp.zeros((T, d_out), dtype=jnp.float32)
        for h in range(num_heads):                  # static, unrolled
            off = h * head_dim
            q_h = qkv[r0:r0 + T, off:off + head_dim]                         # (T, hd)
            k_h = qkv[r0:r0 + T, d_out + off:d_out + off + head_dim]         # (T, hd)
            v_h = qkv[r0:r0 + T, 2 * d_out + off:2 * d_out + off + head_dim]  # (T, hd)

            s = jax.lax.dot_general(q_h, k_h, dn,
                                    preferred_element_type=jnp.float32)      # (T, T)
            s = jnp.where(causal, s, neg)
            m = jnp.max(s, axis=-1, keepdims=True)
            p = jnp.exp(s - m)
            p = p * pl.reciprocal(jnp.sum(p, axis=-1, keepdims=True), approx=True)

            ctx_h = jnp.dot(p, v_h, preferred_element_type=jnp.float32)      # (T, hd)
            # Per-head partial output projection -> no concat, bounded live range.
            acc = acc + jnp.dot(ctx_h, w_proj[off:off + head_dim, :],
                                preferred_element_type=jnp.float32)

        o_ref[r0:r0 + T, :] = (acc + b_proj).astype(o_ref.dtype)


# ------------------------------ Pallas wrapper --------------------------------
def mha_forward(x, w_qkv, w_proj, b_proj, *, num_heads):
    """x: (B, T, d_in); w_qkv: (d_in, 3*d_out); w_proj: (d_out, d_out); b_proj: (d_out,)."""
    B, T, d_in = x.shape
    d_out = w_proj.shape[1]
    head_dim = d_out // num_heads

    # Fold the softmax scale into the Q weight columns (zero in-kernel cost).
    w_qkv = w_qkv.at[:, :d_out].multiply(1.0 / math.sqrt(head_dim))

    # Lane-dense 2-D row slab: batch folded into rows (no data movement).
    x2 = x.reshape(B * T, d_in)

    # At most two grid steps (one per v7x TensorCore); fold batch further into
    # each step so per-step overhead is amortized when B grows.
    b_blk = pl.cdiv(B, 2)
    if B % b_blk != 0:
        b_blk = 1
    n_steps = B // b_blk
    rows_blk = b_blk * T

    itemsize = x.dtype.itemsize
    flops = (2 * B * T * d_in * 3 * d_out        # QKV projection
             + 4 * B * T * T * d_out             # QK^T + PV over all heads
             + 2 * B * T * d_out * d_out)        # output projection
    transcendentals = B * num_heads * T * T      # exp
    bytes_accessed = ((B * T * d_in + d_in * 3 * d_out + d_out * d_out + d_out
                       + B * T * d_out) * itemsize)

    out2 = pl.pallas_call(
        partial(mha_kernel, num_heads=num_heads, seq_len=T),
        out_shape=jax.ShapeDtypeStruct((B * T, d_out), x.dtype),
        grid=(n_steps,),
        in_specs=[
            pl.BlockSpec((rows_blk, d_in), lambda i: (i, 0)),     # per-step row slab
            pl.BlockSpec((d_in, 3 * d_out), lambda i: (0, 0)),    # weights resident
            pl.BlockSpec((d_out, d_out), lambda i: (0, 0)),
            pl.BlockSpec((1, d_out), lambda i: (0, 0)),
        ],
        out_specs=pl.BlockSpec((rows_blk, d_out), lambda i: (i, 0)),
        compiler_params=pltpu.CompilerParams(
            dimension_semantics=("parallel",),
            vmem_limit_bytes=32 * 1024 * 1024,
        ),
        cost_estimate=pl.CostEstimate(flops=flops,
                                      transcendentals=transcendentals,
                                      bytes_accessed=bytes_accessed),
    )(x2, w_qkv, w_proj, b_proj.reshape(1, d_out))
    # TODO(synk): for realistic T/d_out, add flash-style KV tiling + lane-dense
    # output blocking (and v7x-specific smaller tiles); unnecessary at toy size.
    return out2.reshape(B, T, d_out)


# ------------------------- pure-JAX reference (check) -------------------------
def mha_reference(x, w_qkv, w_proj, b_proj, *, num_heads):
    B, T, _ = x.shape
    d_out = w_proj.shape[1]
    hd = d_out // num_heads
    qkv = jnp.einsum("btd,de->bte", x, w_qkv)
    qkv = qkv.reshape(B, T, 3, num_heads, hd)
    qkv = jnp.transpose(qkv, (2, 0, 3, 1, 4))
    q, k, v = qkv[0], qkv[1], qkv[2]
    s = jnp.einsum("bhqd,bhkd->bhqk", q, k) / math.sqrt(hd)
    mask = jnp.tril(jnp.ones((T, T), dtype=bool))
    s = jnp.where(mask, s, -jnp.inf)
    p = jax.nn.softmax(s, axis=-1)
    ctx = jnp.einsum("bhqk,bhkd->bhqd", p, v)
    ctx = jnp.transpose(ctx, (0, 2, 1, 3)).reshape(B, T, d_out)
    return jnp.einsum("btd,de->bte", ctx, w_proj) + b_proj


if __name__ == "__main__":
    key = jax.random.PRNGKey(0)
    k1, k2, k3, k4 = jax.random.split(key, 4)

    batch, seq = 2, 8
    d_in = d_out = 32
    num_heads = 4  # head_dim = 8

    x = jax.random.normal(k1, (batch, seq, d_in), dtype=jnp.float32)
    # nn.Linear weights stored pre-transposed as (in, out) so kernel does x @ w.
    w_qkv = 0.02 * jax.random.normal(k2, (d_in, 3 * d_out), dtype=jnp.float32)
    w_proj = 0.02 * jax.random.normal(k3, (d_out, d_out), dtype=jnp.float32)
    b_proj = 0.02 * jax.random.normal(k4, (d_out,), dtype=jnp.float32)

    out = mha_forward(x, w_qkv, w_proj, b_proj, num_heads=num_heads)
    out = jax.block_until_ready(out)

    assert out.shape == (batch, seq, d_out), out.shape
    assert bool(jnp.all(jnp.isfinite(out)))

    ref = mha_reference(x, w_qkv, w_proj, b_proj, num_heads=num_heads)
    assert bool(jnp.allclose(out, ref, atol=1e-3, rtol=1e-2)), "mismatch vs reference"

    print("KERNEL_OK")
</pallas_src>

<mosaic_0001>
module attributes {stable_mosaic.version = 11 : i64} {
  func.func @mha_kernel(%arg0: i32, %arg1: memref<8x32xf32, #tpu.memory_space<vmem>>, %arg2: memref<32x96xf32, #tpu.memory_space<vmem>>, %arg3: memref<32x32xf32, #tpu.memory_space<vmem>>, %arg4: memref<1x32xf32, #tpu.memory_space<vmem>>, %arg5: memref<8x32xf32, #tpu.memory_space<vmem>>) attributes {dimension_semantics = [#tpu.dimension_semantics<parallel>], iteration_bounds = array<i64: 2>, scalar_prefetch = 0 : i64, scratch_operands = 0 : i64, tpu.core_type = #tpu.core_type<tc>, window_params = [{transform_indices = @transform_0, window_bounds = array<i64: 8, 32>}, {pipeline_mode = #tpu.pipeline_mode<synchronous>, transform_indices = @transform_1, window_bounds = array<i64: 32, 96>}, {pipeline_mode = #tpu.pipeline_mode<synchronous>, transform_indices = @transform_2, window_bounds = array<i64: 32, 32>}, {pipeline_mode = #tpu.pipeline_mode<synchronous>, transform_indices = @transform_3, window_bounds = array<i64: 1, 32>}, {transform_indices = @transform_4, window_bounds = array<i64: 8, 32>}]} {
    %c0 = arith.constant 0 : index
    %c0_0 = arith.constant 0 : index
    %0 = vector.load %arg1[%c0, %c0_0] : memref<8x32xf32, #tpu.memory_space<vmem>>, vector<8x32xf32>
    %c0_1 = arith.constant 0 : index
    %c0_2 = arith.constant 0 : index
    %1 = vector.load %arg2[%c0_1, %c0_2] : memref<32x96xf32, #tpu.memory_space<vmem>>, vector<32x96xf32>
    %c0_3 = arith.constant 0 : index
    %c0_4 = arith.constant 0 : index
    %2 = vector.load %arg3[%c0_3, %c0_4] : memref<32x32xf32, #tpu.memory_space<vmem>>, vector<32x32xf32>
    %c0_5 = arith.constant 0 : index
    %c0_6 = arith.constant 0 : index
    %3 = vector.load %arg4[%c0_5, %c0_6] : memref<1x32xf32, #tpu.memory_space<vmem>>, vector<1x32xf32>
    %cst = arith.constant dense<0.000000e+00> : vector<8x96xf32>
    %4 = tpu.matmul %0, %1, %cst {dimension_numbers = #tpu.dot_dimension_numbers<[1], [0], [0], [1], [0, 0, 1, 1], [], []>} : vector<8x32xf32>, vector<32x96xf32>, vector<8x96xf32> -> vector<8x96xf32>
    %5 = tpu.iota {dimensions = array<i32: 0>} : vector<8x8xi32>
    %6 = tpu.iota {dimensions = array<i32: 1>} : vector<8x8xi32>
    %7 = arith.cmpi sle, %6, %5 : vector<8x8xi32>
    %cst_7 = arith.constant 0.000000e+00 : f32
    %8 = vector.broadcast %cst_7 : f32 to vector<8x32xf32>
    %9 = vector.extract_strided_slice %4 {offsets = [0, 0], sizes = [8, 8], strides = [1, 1]} : vector<8x96xf32> to vector<8x8xf32>
    %10 = vector.extract_strided_slice %4 {offsets = [0, 32], sizes = [8, 8], strides = [1, 1]} : vector<8x96xf32> to vector<8x8xf32>
    %11 = vector.extract_strided_slice %4 {offsets = [0, 64], sizes = [8, 8], strides = [1, 1]} : vector<8x96xf32> to vector<8x8xf32>
    %cst_8 = arith.constant dense<0.000000e+00> : vector<8x8xf32>
    %12 = tpu.matmul %9, %10, %cst_8 {dimension_numbers = #tpu.dot_dimension_numbers<[1], [1], [0], [0], [0, 0, 1, 0], [], []>} : vector<8x8xf32>, vector<8x8xf32>, vector<8x8xf32> -> vector<8x8xf32>
    %cst_9 = arith.constant -1.000000e+30 : f32
    %13 = vector.broadcast %cst_9 : f32 to vector<8x8xf32>
    %14 = arith.select %7, %12, %13 : vector<8x8xi1>, vector<8x8xf32>
    %cst_10 = arith.constant dense<0xFF800000> : vector<8xf32>
    %15 = vector.multi_reduction <maximumf>, %14, %cst_10 [1] : vector<8x8xf32> to vector<8xf32>
    %16 = vector.shape_cast %15 : vector<8xf32> to vector<8x1xf32>
    %17 = vector.broadcast %16 : vector<8x1xf32> to vector<8x8xf32>
    %18 = arith.subf %14, %17 : vector<8x8xf32>
    %19 = math.exp %18 : vector<8x8xf32>
    %cst_11 = arith.constant dense<0.000000e+00> : vector<8xf32>
    %20 = vector.multi_reduction <add>, %19, %cst_11 [1] : vector<8x8xf32> to vector<8xf32>
    %21 = vector.shape_cast %20 : vector<8xf32> to vector<8x1xf32>
    %22 = tpu.reciprocal %21 {approx = true} : vector<8x1xf32> -> vector<8x1xf32>
    %23 = vector.broadcast %22 : vector<8x1xf32> to vector<8x8xf32>
    %24 = arith.mulf %19, %23 : vector<8x8xf32>
    %cst_12 = arith.constant dense<0.000000e+00> : vector<8x8xf32>
    %25 = tpu.matmul %24, %11, %cst_12 {dimension_numbers = #tpu.dot_dimension_numbers<[1], [0], [0], [1], [0, 0, 1, 1], [], []>} : vector<8x8xf32>, vector<8x8xf32>, vector<8x8xf32> -> vector<8x8xf32>
    %26 = vector.extract_strided_slice %2 {offsets = [0, 0], sizes = [8, 32], strides = [1, 1]} : vector<32x32xf32> to vector<8x32xf32>
    %cst_13 = arith.constant dense<0.000000e+00> : vector<8x32xf32>
    %27 = tpu.matmul %25, %26, %cst_13 {dimension_numbers = #tpu.dot_dimension_numbers<[1], [0], [0], [1], [0, 0, 1, 1], [], []>} : vector<8x8xf32>, vector<8x32xf32>, vector<8x32xf32> -> vector<8x32xf32>
    %28 = arith.addf %8, %27 : vector<8x32xf32>
    %29 = vector.extract_strided_slice %4 {offsets = [0, 8], sizes = [8, 8], strides = [1, 1]} : vector<8x96xf32> to vector<8x8xf32>
    %30 = vector.extract_strided_slice %4 {offsets = [0, 40], sizes = [8, 8], strides = [1, 1]} : vector<8x96xf32> to vector<8x8xf32>
    %31 = vector.extract_strided_slice %4 {offsets = [0, 72], sizes = [8, 8], strides = [1, 1]} : vector<8x96xf32> to vector<8x8xf32>
    %cst_14 = arith.constant dense<0.000000e+00> : vector<8x8xf32>
    %32 = tpu.matmul %29, %30, %cst_14 {dimension_numbers = #tpu.dot_dimension_numbers<[1], [1], [0], [0], [0, 0, 1, 0], [], []>} : vector<8x8xf32>, vector<8x8xf32>, vector<8x8xf32> -> vector<8x8xf32>
    %cst_15 = arith.constant -1.000000e+30 : f32
    %33 = vector.broadcast %cst_15 : f32 to vector<8x8xf32>
    %34 = arith.select %7, %32, %33 : vector<8x8xi1>, vector<8x8xf32>
    %cst_16 = arith.constant dense<0xFF800000> : vector<8xf32>
    %35 = vector.multi_reduction <maximumf>, %34, %cst_16 [1] : vector<8x8xf32> to vector<8xf32>
    %36 = vector.shape_cast %35 : vector<8xf32> to vector<8x1xf32>
    %37 = vector.broadcast %36 : vector<8x1xf32> to vector<8x8xf32>
    %38 = arith.subf %34, %37 : vector<8x8xf32>
    %39 = math.exp %38 : vector<8x8xf32>
    %cst_17 = arith.constant dense<0.000000e+00> : vector<8xf32>
    %40 = vector.multi_reduction <add>, %39, %cst_17 [1] : vector<8x8xf32> to vector<8xf32>
    %41 = vector.shape_cast %40 : vector<8xf32> to vector<8x1xf32>
    %42 = tpu.reciprocal %41 {approx = true} : vector<8x1xf32> -> vector<8x1xf32>
    %43 = vector.broadcast %42 : vector<8x1xf32> to vector<8x8xf32>
    %44 = arith.mulf %39, %43 : vector<8x8xf32>
    %cst_18 = arith.constant dense<0.000000e+00> : vector<8x8xf32>
    %45 = tpu.matmul %44, %31, %cst_18 {dimension_numbers = #tpu.dot_dimension_numbers<[1], [0], [0], [1], [0, 0, 1, 1], [], []>} : vector<8x8xf32>, vector<8x8xf32>, vector<8x8xf32> -> vector<8x8xf32>
    %46 = vector.extract_strided_slice %2 {offsets = [8, 0], sizes = [8, 32], strides = [1, 1]} : vector<32x32xf32> to vector<8x32xf32>
    %cst_19 = arith.constant dense<0.000000e+00> : vector<8x32xf32>
    %47 = tpu.matmul %45, %46, %cst_19 {dimension_numbers = #tpu.dot_dimension_numbers<[1], [0], [0], [1], [0, 0, 1, 1], [], []>} : vector<8x8xf32>, vector<8x32xf32>, vector<8x32xf32> -> vector<8x32xf32>
    %48 = arith.addf %28, %47 : vector<8x32xf32>
    %49 = vector.extract_strided_slice %4 {offsets = [0, 16], sizes = [8, 8], strides = [1, 1]} : vector<8x96xf32> to vector<8x8xf32>
    %50 = vector.extract_strided_slice %4 {offsets = [0, 48], sizes = [8, 8], strides = [1, 1]} : vector<8x96xf32> to vector<8x8xf32>
    %51 = vector.extract_strided_slice %4 {offsets = [0, 80], sizes = [8, 8], strides = [1, 1]} : vector<8x96xf32> to vector<8x8xf32>
    %cst_20 = arith.constant dense<0.000000e+00> : vector<8x8xf32>
    %52 = tpu.matmul %49, %50, %cst_20 {dimension_numbers = #tpu.dot_dimension_numbers<[1], [1], [0], [0], [0, 0, 1, 0], [], []>} : vector<8x8xf32>, vector<8x8xf32>, vector<8x8xf32> -> vector<8x8xf32>
    %cst_21 = arith.constant -1.000000e+30 : f32
    %53 = vector.broadcast %cst_21 : f32 to vector<8x8xf32>
    %54 = arith.select %7, %52, %53 : vector<8x8xi1>, vector<8x8xf32>
    %cst_22 = arith.constant dense<0xFF800000> : vector<8xf32>
    %55 = vector.multi_reduction <maximumf>, %54, %cst_22 [1] : vector<8x8xf32> to vector<8xf32>
    %56 = vector.shape_cast %55 : vector<8xf32> to vector<8x1xf32>
    %57 = vector.broadcast %56 : vector<8x1xf32> to vector<8x8xf32>
    %58 = arith.subf %54, %57 : vector<8x8xf32>
    %59 = math.exp %58 : vector<8x8xf32>
    %cst_23 = arith.constant dense<0.000000e+00> : vector<8xf32>
    %60 = vector.multi_reduction <add>, %59, %cst_23 [1] : vector<8x8xf32> to vector<8xf32>
    %61 = vector.shape_cast %60 : vector<8xf32> to vector<8x1xf32>
    %62 = tpu.reciprocal %61 {approx = true} : vector<8x1xf32> -> vector<8x1xf32>
    %63 = vector.broadcast %62 : vector<8x1xf32> to vector<8x8xf32>
    %64 = arith.mulf %59, %63 : vector<8x8xf32>
    %cst_24 = arith.constant dense<0.000000e+00> : vector<8x8xf32>
    %65 = tpu.matmul %64, %51, %cst_24 {dimension_numbers = #tpu.dot_dimension_numbers<[1], [0], [0], [1], [0, 0, 1, 1], [], []>} : vector<8x8xf32>, vector<8x8xf32>, vector<8x8xf32> -> vector<8x8xf32>
    %66 = vector.extract_strided_slice %2 {offsets = [16, 0], sizes = [8, 32], strides = [1, 1]} : vector<32x32xf32> to vector<8x32xf32>
    %cst_25 = arith.constant dense<0.000000e+00> : vector<8x32xf32>
    %67 = tpu.matmul %65, %66, %cst_25 {dimension_numbers = #tpu.dot_dimension_numbers<[1], [0], [0], [1], [0, 0, 1, 1], [], []>} : vector<8x8xf32>, vector<8x32xf32>, vector<8x32xf32> -> vector<8x32xf32>
    %68 = arith.addf %48, %67 : vector<8x32xf32>
    %69 = vector.extract_strided_slice %4 {offsets = [0, 24], sizes = [8, 8], strides = [1, 1]} : vector<8x96xf32> to vector<8x8xf32>
    %70 = vector.extract_strided_slice %4 {offsets = [0, 56], sizes = [8, 8], strides = [1, 1]} : vector<8x96xf32> to vector<8x8xf32>
    %71 = vector.extract_strided_slice %4 {offsets = [0, 88], sizes = [8, 8], strides = [1, 1]} : vector<8x96xf32> to vector<8x8xf32>
    %cst_26 = arith.constant dense<0.000000e+00> : vector<8x8xf32>
    %72 = tpu.matmul %69, %70, %cst_26 {dimension_numbers = #tpu.dot_dimension_numbers<[1], [1], [0], [0], [0, 0, 1, 0], [], []>} : vector<8x8xf32>, vector<8x8xf32>, vector<8x8xf32> -> vector<8x8xf32>
    %cst_27 = arith.constant -1.000000e+30 : f32
    %73 = vector.broadcast %cst_27 : f32 to vector<8x8xf32>
    %74 = arith.select %7, %72, %73 : vector<8x8xi1>, vector<8x8xf32>
    %cst_28 = arith.constant dense<0xFF800000> : vector<8xf32>
    %75 = vector.multi_reduction <maximumf>, %74, %cst_28 [1] : vector<8x8xf32> to vector<8xf32>
    %76 = vector.shape_cast %75 : vector<8xf32> to vector<8x1xf32>
    %77 = vector.broadcast %76 : vector<8x1xf32> to vector<8x8xf32>
    %78 = arith.subf %74, %77 : vector<8x8xf32>
    %79 = math.exp %78 : vector<8x8xf32>
    %cst_29 = arith.constant dense<0.000000e+00> : vector<8xf32>
    %80 = vector.multi_reduction <add>, %79, %cst_29 [1] : vector<8x8xf32> to vector<8xf32>
    %81 = vector.shape_cast %80 : vector<8xf32> to vector<8x1xf32>
    %82 = tpu.reciprocal %81 {approx = true} : vector<8x1xf32> -> vector<8x1xf32>
    %83 = vector.broadcast %82 : vector<8x1xf32> to vector<8x8xf32>
    %84 = arith.mulf %79, %83 : vector<8x8xf32>
    %cst_30 = arith.constant dense<0.000000e+00> : vector<8x8xf32>
    %85 = tpu.matmul %84, %71, %cst_30 {dimension_numbers = #tpu.dot_dimension_numbers<[1], [0], [0], [1], [0, 0, 1, 1], [], []>} : vector<8x8xf32>, vector<8x8xf32>, vector<8x8xf32> -> vector<8x8xf32>
    %86 = vector.extract_strided_slice %2 {offsets = [24, 0], sizes = [8, 32], strides = [1, 1]} : vector<32x32xf32> to vector<8x32xf32>
    %cst_31 = arith.constant dense<0.000000e+00> : vector<8x32xf32>
    %87 = tpu.matmul %85, %86, %cst_31 {dimension_numbers = #tpu.dot_dimension_numbers<[1], [0], [0], [1], [0, 0, 1, 1], [], []>} : vector<8x8xf32>, vector<8x32xf32>, vector<8x32xf32> -> vector<8x32xf32>
    %88 = arith.addf %68, %87 : vector<8x32xf32>
    %89 = vector.broadcast %3 : vector<1x32xf32> to vector<8x32xf32>
    %90 = arith.addf %88, %89 : vector<8x32xf32>
    %c0_32 = arith.constant 0 : index
    %c0_33 = arith.constant 0 : index
    %91 = vector.load %arg5[%c0_32, %c0_33] : memref<8x32xf32, #tpu.memory_space<vmem>>, vector<8x32xf32>
    tpu.vector_store %arg5[%c0_32, %c0_33], %90 {strides = array<i32>} : memref<8x32xf32, #tpu.memory_space<vmem>>, vector<8x32xf32>,
    return
  }
  func.func @transform_0(%arg0: i32) -> (i32, i32) {
    %c0_i32 = arith.constant 0 : i32
    %c0_i32_0 = arith.constant 0 : i32
    return %arg0, %c0_i32 : i32, i32
  }
  func.func @transform_1(%arg0: i32) -> (i32, i32) {
    %c0_i32 = arith.constant 0 : i32
    %c0_i32_0 = arith.constant 0 : i32
    %c0_i32_1 = arith.constant 0 : i32
    return %c0_i32, %c0_i32_0 : i32, i32
  }
  func.func @transform_2(%arg0: i32) -> (i32, i32) {
    %c0_i32 = arith.constant 0 : i32
    %c0_i32_0 = arith.constant 0 : i32
    %c0_i32_1 = arith.constant 0 : i32
    return %c0_i32, %c0_i32_0 : i32, i32
  }
  func.func @transform_3(%arg0: i32) -> (i32, i32) {
    %c0_i32 = arith.constant 0 : i32
    %c0_i32_0 = arith.constant 0 : i32
    %c0_i32_1 = arith.constant 0 : i32
    return %c0_i32, %c0_i32_0 : i32, i32
  }
  func.func @transform_4(%arg0: i32) -> (i32, i32) {
    %c0_i32 = arith.constant 0 : i32
    %c0_i32_0 = arith.constant 0 : i32
    return %arg0, %c0_i32 : i32, i32
  }
}

</mosaic_0001>

<bundles_post_ra>
// kernel: tpu_custom_call.1
= control target key start
LH: loop header
LB: loop body
LE: loop exit
PB: predicated region body
PF: predicated region fallthrough
CT: control target
= control target key end

     0   :  { %9 = vsyncpa [#allocation3], 0  ;;  %s1286_s0 = inlined_call_operand.hbm [shape: f32[16,32], index: 0, kind: input, shape index: {}]   ;;  %s1287_s1 = inlined_call_operand.hbm [shape: f32[32,96], index: 1, kind: input, shape index: {}]   ;;  %s1288_s2 = inlined_call_operand.hbm [shape: f32[32,32], index: 2, kind: input, shape index: {}]   ;;  %s1289_s3 = inlined_call_operand.vmem [shape: f32[1,32], index: 3, kind: input, shape index: {}]   ;;  %s1290_s4 = inlined_call_operand.hbm [shape: f32[16,32], index: 4, kind: output, shape index: {}]  }
   0x1   :  { %11 = vsyncpa [#allocation3 + $0x1], 0 }
   0x2   :  { %12 = vsyncpa [#allocation6], 0 }
   0x3   :  { %13 = vsyncpa [#allocation4], 0 }
   0x4   :  { %15 = vsyncpa [#allocation4 + $0x1], 0  ;;  %s1087_s15 = smov 0   ;;  %s1089_s16 = smov 0  }
   0x5   :  { %s1091_s17 = smov 0   ;;  %s1093_s18 = smov 0  }
   0x6 LB: > { %s152_s21 = sshll.u32 %s1287_s1, 4  ;;  %s1111_s22 = sadd.s32 4294967295, %s1045_s18   ;;  %s1045_s18 = sphi %s1093_s18, %s1301_s18   ;;  %s1041_s17 = sphi %s1091_s17, %s1300_s17   ;;  %s1037_s16 = sphi %s1089_s16, %s1299_s16   ;;  %s1033_s15 = sphi %s1087_s15, %s1298_s15   ;;  %s153_s21 = int_to_ptr.hbm [resolvable:$true] %s152_s21 }
   0x7   : > { %p756_p0 = scmp.ge.s32.totalorder %s1045_s18, 1  ;;  %p42_p1 = scmp.eq.s32.totalorder %s1111_s22, 0 }
   0x8   : > { %p141_p2 = scmp.lt.s32.totalorder %s1045_s18, 3  ;;  %s1047_s24 = smov [#allocation5]  }
   0x9   : > { %s154_s25 = sshll.u32 %s1047_s24, 4  ;;  %s166_s28 = sshll.u32 %s1288_s2, 4  ;;  %s155_s25 = int_to_ptr.vmem [resolvable:$true] %s154_s25  ;;  %s167_s28 = int_to_ptr.hbm [resolvable:$true] %s166_s28 }
   0xa   : > { %p1116_p3 = pnand %p756_p0, %p141_p2  ;;  %s1048_s29 = smov [#allocation7]  }
   0xb   : > { %s168_s30 = sshll.u32 %s1048_s29, 4  ;;  %s1049_s5 = smov 128   ;;  %s169_s30 = int_to_ptr.vmem [resolvable:$true] %s168_s30 }
   0xc   : > { %p800_p4 = pneg %p1116_p3  ;;  %s1050_s6 = smov 8  }
   0xd   : > { %s755_s7 = sadd.s32 4294967294, %s1045_s18   ;;  %s1130_s8 = sadd.s32 1, %s1045_s18  }
   0xe   : > { %p801_p6 = pnand %p800_p4, %p42_p1  ;;  %s25_s9 = ssub.s32 %s1045_s18, %s1130_s8 }
   0xf   : > { %s28_s10 = sadd.s32 1, %s1041_s17  ;;  %p26_p7 = scmp.eq.s32.totalorder %s25_s9, 0 }
  0x10   : > { %803 = dma.hbm_to_vmem [thread:$0]  (!%p801_p6), %s153_s21, 512, %s155_s25, [#allocation6], %s1049_s5, %s1049_s5, %s1050_s6  }
  0x11   : > { %806 = dma.hbm_to_vmem [thread:$0]  (!%p801_p6), %s167_s28, 512, %s169_s30, [#allocation6], %s1049_s5, %s1049_s5, %s1050_s6  }
  0x12   : > { %p35_p8 = scmp.ne.s32.totalorder %s1041_s17, %s1037_s16  ;;  %p36_p9 = scmp.eq.s32.totalorder %s1045_s18, 0 }
  0x13   : > { %p41_p10 = scmp.ne.s32.totalorder %s1037_s16, %s1033_s15  ;;  %p128_p13 = scmp.eq.s32.totalorder %s1111_s22, 1 }
  0x14   : > { %s1141_s11 = scalar_select %p26_p7, %s1041_s17, %s28_s10  }
  0x15   : > { %p1143_p11 = por %p36_p9, %p35_p8  ;;  %p1149_p12 = por %p42_p1, %p41_p10 }
  0x16   : > { %p134_p0 = scmp.eq.s32.totalorder %s755_s7, 1  ;;  %p817_p2 = scmp.lt.s32.totalorder %s1045_s18, 2 }
  0x17   : > { %s185_s14 = sand.u32 1, %s1041_s17   ;;  %p1156_p4 = por %p128_p13, %p35_p8 }
  0x18   : > { %p1160_p6 = por %p134_p0, %p41_p10  ;;  %s760_s21 = sshll.u32 %s185_s14, 3 }
  0x19   : > { %s761_s24 = sshll.u32 %s1045_s18, 3  ;;  %s189_s28 = scalar_lea.vmem [#allocation2], %s760_s21 }
  0x1a   : > { %s193_s27 = scalar_lea.hbm %s1286_s0, %s761_s24  ;;  %s197_s29 = sshll.u32 %s189_s28, 4  ;;  %s198_s29 = int_to_ptr.vmem [resolvable:$true] %s197_s29 }
  0x1b   : > { %s195_s30 = sshll.u32 %s193_s27, 4  ;;  %p1170_p7 = pnand %p817_p2, %p1143_p11  ;;  %s196_s30 = int_to_ptr.hbm [resolvable:$true] %s195_s30 }
  0x1c   : > { %s186_s6 = scalar_lea.sflag [#allocation3], %s185_s14  ;;  %s945_s7 = sshra.s32 %s196_s30, 4  ;;  %s946_s7 = int_to_ptr.hbm [resolvable:$true] %s945_s7 }
  0x1d   : > { %s947_s9 = scalar_lea.hbm %s946_s7, 8  ;;  %p949_p9 = pneg %p1170_p7 }
  0x1e   : > { %p948_p8 = scmp.ne.s32.totalorder %s946_s7, %s947_s9  ;;  %s952_s24 = scalar_lea.hbm %s1286_s0, 16 }
  0x1f   : > { %p953_p11 = scmp.lt.s32.totalorder %s946_s7, %s1286_s0  ;;  %p954_p0 = scmp.lt.s32.totalorder %s952_s24, %s947_s9 }
  0x20   : > { %p950_p10 = pnand %p949_p9, %p948_p8 }
  0x21   : > { %p955_p2 = por %p954_p0, %p953_p11 }
  0x22   : > { %p951_p13 = pneg %p950_p10 }
  0x24   : > { %p956_p5 = pnand %p955_p2, %p951_p13 }
  0x26   : > { %959 = shalt.err (!%p956_p5)
}
  0x27   : > { %810 = dma.hbm_to_vmem [thread:$0]  (!%p1170_p7), %s196_s30, 128, %s198_s29, %s186_s6  }
  0x28   : > { %206 = sbr.rel (%p1116_p3) target bundleno = 1489 (0x5d1), region = 36  ;;  %s1187_s14 = sand.u32 (!%p1116_p3), 1, %s1037_s16  }
  0x29   : > { %s763_s26 = sshll.u32 (!%p1116_p3), %s1187_s14, 3  ;;  %s209_s27 = scalar_lea.sflag (!%p1116_p3), [#allocation3], %s1187_s14 }
  0x2a   : > { %s212_s28 = scalar_lea.vmem (!%p1116_p3), [#allocation2], %s763_s26 }
  0x2d   : > { %1020 = dma.done.wait (%p1149_p12), %s209_s27, 128  }
  0x2e   : > { %1022 = vsyncadd (%p1149_p12), %s209_s27, 4294967168 }
  0x2f   : > { %1024 = dma.done.wait (%p42_p1), [#allocation6], 1024  }
  0x30   : > { %1026 = vsyncadd (%p42_p1), [#allocation6], 4294966272  ;;  %v252_v0 = vld [vmem:[#allocation5 + $0x18] sm:$0xff]  ;;  %v251_v1 = vld [vmem:[#allocation5 + $0x10] sm:$0xff]  ;;  %vm258_vm0 = vcmask 261120   ;;  %s1051_s23 = smov 88   ;;  %v282_v13 = vlaneseq }
  0x31   : > { %274 = vmatpush.msra.mxu0 %v252_v0  ;;  %v250_v2 = vld [vmem:[#allocation5 + $0x8] sm:$0xff]  ;;  %v249_v3 = vld [vmem:[#allocation5] sm:$0xff]  ;;  %v248_v4 = vld [vmem:[%s212_s28] sm:$0xff]  ;;  %s1052_s13 = smov 96   ;;  %s1053_s29 = smov 120   ;;  %vm290_vm1 = vcmask 64512  }
  0x32   : > { %s1054_s30 = smov 72   ;;  %s1055_s5 = smov 104   ;;  %v253_v6 = vld [vmem:[#allocation7] sm:$0xff]  ;;  %v283_v14 = vshrl.u32 %v282_v13, 7  ;;  %v285_v15 = vand.u32 127, %v282_v13 }
  0x33   : > { %275 = vmatpush.msra.mxu0 %v251_v1  ;;  %s1056_s6 = smov 80   ;;  %s1057_s7 = smov 64   ;;  %v868_v13 = vld [vmem:[%s1289_s3] ss:$0 sm:$0xff] }
  0x34   : > { %vm286_vm2 = vcmp.le.s32.totalorder %v285_v15, %v283_v14  ;;  %s1058_s9 = smov 112   ;;  %s1059_s10 = smov 48  }
  0x35   : > { %276 = vmatpush.msra.mxu0 %v250_v2  ;;  %s1060_s21 = smov 56   ;;  %s1061_s24 = smov 40  }
  0x36   : > { %s785_s25 = sshll.u32 %s1111_s22, 3  ;;  %s651_s22 = scalar_lea.sflag [#allocation4], %s1187_s14 }
  0x37   : > { %277 = vmatpush.msra.mxu0 %v249_v3  ;;  %v254_v3 = vld [vmem:[#allocation7 + $0x8] sm:$0xff]  ;;  %s661_s28 = scalar_lea.hbm %s1290_s4, %s785_s25 }
  0x38   : > { %767 = vmatmul.msk.f32.vlgmr.msra.gmra.mxu0 %vm258_vm0, %v248_v4  ;;  %v255_v4 = vld [vmem:[#allocation7 + $0x10] sm:$0xff] }
  0xb5   : > { %v1202_v5 = vpop.f32.mrf.mxu0 }
  0xb6   : > { %355 = vrot.lane.b32.xlu2 %v1202_v5, %s1051_s23  ;;  %288 = vrot.lane.b32.xlu0 %v1202_v5, %s1052_s13 }
  0xbe   : > { %353 = vrot.lane.b32.xlu2 %v1202_v5, %s1053_s29  ;;  %s247_s29 = scalar_lea.vmem [#allocation8], %s763_s26  ;;  %s995_s26 = scalar_lea.hbm %s1290_s4, 16 }
  0xc6   : > { %557 = vrot.lane.b32.xlu2 %v1202_v5, %s1054_s30  ;;  %s663_s30 = sshll.u32 %s247_s29, 4  ;;  %s664_s30 = int_to_ptr.vmem [resolvable:$true] %s663_s30 }
  0xce   : > { %555 = vrot.lane.b32.xlu2 %v1202_v5, %s1055_s5  ;;  %s665_s5 = sshll.u32 %s661_s28, 4  ;;  %s666_s5 = int_to_ptr.hbm [resolvable:$true] %s665_s5 }
  0xd6   : > { %467 = vrot.lane.b32.xlu2 %v1202_v5, %s1056_s6  ;;  %s989_s6 = sshra.s32 %s666_s5, 4  ;;  %s990_s6 = int_to_ptr.hbm [resolvable:$true] %s989_s6 }
  0xd7   : > { %p996_p12 = scmp.lt.s32.totalorder %s990_s6, %s1290_s4 }
 0x110   : > { %v356_v7 = vpop.permute.xlu2 %355 }
 0x111   : > { %771 = vmatpush.xpose.msk.msra.mxu3 %vm290_vm1, %v356_v7  ;;  %v256_v7 = vld [vmem:[#allocation7 + $0x18] sm:$0xff] }
 0x115   : > { %460 = vmatpush.msrb.mxu3 %v253_v6 }
 0x118   : > { %v354_v8 = vpop.permute.xlu2 %353 }
 0x119   : > { %772 = vmatmul.msk.f32.vlgmr.msra.gmra.mxu3 %vm290_vm1, %v354_v8 }
 0x120   : > { %v558_v9 = vpop.permute.xlu2 %557 }
 0x121   : > { %780 = vmatpush.xpose.msk.msra.mxu3 %vm290_vm1, %v558_v9 }
 0x128   : > { %v556_v10 = vpop.permute.xlu2 %555  ;;  %v289_v11 = vpop.permute.xlu0 %288 }
 0x129   : > { %768 = vmatpush.xpose.msk.msra.mxu1 %vm290_vm1, %v289_v11 }
 0x12c   : > { %769 = vmatmul.msk.f32.vlgmr.msra.gmra.mxu1 %vm290_vm1, %v1202_v5 }
 0x12d   : > { %437 = vmatpush.msrb.mxu1 %v254_v3 }
 0x12f   : > { %549 = vmatpush.msra.mxu1 %v255_v4 }
 0x130   : > { %v468_v12 = vpop.permute.xlu2 %467 }
 0x131   : > { %776 = vmatpush.xpose.msk.msrb.mxu0 %vm290_vm1, %v468_v12 }
 0x19c   : > { %v378_v16 = vpop.f32.mrf.mxu3 }
 0x19d   : > { %v381_v17 = vsel %vm286_vm2, %v378_v16, -1e+30 }
 0x19e   : > { %v382_v18 = vsel %vm290_vm1, %v381_v17, -inf }
 0x19f   : > { %383 = vmax.xlane.f32.xlu2 %v382_v18 }
 0x1a9   : > { %v312_v19 = vpop.f32.mrf.mxu1 }
 0x1aa   : > { %v315_v20 = vsel %vm286_vm2, %v312_v19, -1e+30 }
 0x1ab   : > { %v316_v21 = vsel %vm290_vm1, %v315_v20, -inf }
 0x1ac   : > { %317 = vmax.xlane.f32.xlu0 %v316_v21 }
 0x212   : > { %v384_v36 = vpop.xlane.xlu2 %383 }
 0x213   : > { %v385_v38 = vsub.f32 %v381_v17, %v384_v36 }
 0x215   : > { %v386_v39 = vmul.f32 1.442695, %v385_v38 }
 0x21f   : > { %v318_v22 = vpop.xlane.xlu0 %317 }
 0x220   : > { %v319_v23 = vsub.f32 %v315_v20, %v318_v22 }
 0x222   : > { %v320_v24 = vmul.f32 1.442695, %v319_v23 }
 0x224   : > { %869 = vpow2.f32 %v320_v24 }
 0x22a   : > { %v870_v25 = vpop.eup %869 }
 0x22b   : > { %v322_v26 = vsel %vm290_vm1, %v870_v25, 0.0 }
 0x22c   : > { %323 = vadd.xlane.f32.xlu1 %v322_v26 }
 0x245   : > { %327 = vrot.lane.b32.xlu1 %v1202_v5, %s1057_s7  ;;  %s991_s7 = scalar_lea.hbm %s990_s6, 8 }
 0x246   : > { %p992_p1 = scmp.ne.s32.totalorder %s990_s6, %s991_s7  ;;  %p997_p7 = scmp.lt.s32.totalorder %s995_s26, %s991_s7 }
 0x248   : > { %p993_p3 = pnand %p992_p1, %p1156_p4  ;;  %p998_p8 = por %p997_p7, %p996_p12 }
 0x24a   : > { %p994_p5 = pneg %p993_p3 }
 0x24c   : > { %p999_p9 = pnand %p998_p8, %p994_p5 }
 0x24d   : > { %465 = vrot.lane.b32.xlu1 %v1202_v5, %s1058_s9 }
 0x29f   : > { %v324_v27 = vpop.xlane.xlu1 %323 }
 0x2a0   : > { %871 = vrcp.f32 %v324_v27 }
 0x2a1   : > { %873 = vpow2.f32 %v386_v39 }
 0x2a6   : > { %v872_v28 = vpop.eup %871 }
 0x2a7   : > { %v326_v30 = vmul.f32 %v872_v28, %v870_v25  ;;  %v874_v46 = vpop.eup %873 }
 0x2a8   : > { %v388_v47 = vsel %vm290_vm1, %v874_v46, 0.0 }
 0x2b7   : > { %v328_v29 = vpop.permute.xlu1 %327 }
 0x2b8   : > { %348 = vmatpush.msra.mxu2 %v328_v29 }
 0x2b9   : > { %770 = vmatmul.msk.f32.vlgmr.msra.gmra.mxu2 %vm290_vm1, %v326_v30 }
 0x2bf   : > { %v466_v31 = vpop.permute.xlu1 %465 }
 0x2c0   : > { %777 = vmatmul.msk.f32.vlgmr.msrb.gmra.mxu0 %vm290_vm1, %v466_v31 }
 0x33c   : > { %v350_v32 = vpop.f32.mrf.mxu2 }
 0x33d   : > { %775 = vmatmul.msk.f32.vlgmr.msrb.gmra.mxu3 %vm290_vm1, %v350_v32  ;;  %v490_v33 = vpop.f32.mrf.mxu0 }
 0x33e   : > { %v493_v34 = vsel %vm286_vm2, %v490_v33, -1e+30 }
 0x33f   : > { %v494_v35 = vsel %vm290_vm1, %v493_v34, -inf }
 0x340   : > { %495 = vmax.xlane.f32.xlu1 %v494_v35 }
 0x345   : > { %781 = vmatmul.msk.f32.vlgmr.msra.gmra.mxu3 %vm290_vm1, %v556_v10 }
 0x359   : > { %505 = vrot.lane.b32.xlu1 %v1202_v5, %s1059_s10 }
 0x3b3   : > { %v496_v40 = vpop.xlane.xlu1 %495 }
 0x3b4   : > { %v497_v42 = vsub.f32 %v493_v34, %v496_v40 }
 0x3b6   : > { %v498_v45 = vmul.f32 1.442695, %v497_v42 }
 0x3b8   : > { %875 = vpow2.f32 %v498_v45 }
 0x3be   : > { %v876_v48 = vpop.eup %875 }
 0x3bf   : > { %v500_v49 = vsel %vm290_vm1, %v876_v48, 0.0 }
 0x3c0   : > { %v1231_v37 = vpop.f32.mrf.mxu3 }
 0x3c8   : > { %v580_v41 = vpop.f32.mrf.mxu3 }
 0x3c9   : > { %v583_v43 = vsel %vm286_vm2, %v580_v41, -1e+30 }
 0x3ca   : > { %v584_v44 = vsel %vm290_vm1, %v583_v43, -inf }
 0x3cb   : > { %585 = vmax.xlane.f32.xlu0 %v584_v44  ;;  %v506_v60 = vpop.permute.xlu1 %505 }
 0x3d3   : > { %389 = vadd.xlane.f32.xlu0 %v388_v47 }
 0x3db   : > { %501 = vadd.xlane.f32.xlu0 %v500_v49 }
 0x3ef   : > { %393 = vrot.lane.b32.xlu0 %v1202_v5, %s1060_s21 }
 0x43e   : > { %v586_v50 = vpop.xlane.xlu0 %585 }
 0x43f   : > { %v587_v51 = vsub.f32 %v583_v43, %v586_v50 }
 0x441   : > { %v588_v52 = vmul.f32 1.442695, %v587_v51 }
 0x443   : > { %877 = vpow2.f32 %v588_v52 }
 0x446   : > { %v390_v55 = vpop.xlane.xlu0 %389 }
 0x447   : > { %879 = vrcp.f32 %v390_v55 }
 0x449   : > { %v878_v53 = vpop.eup %877 }
 0x44a   : > { %v590_v54 = vsel %vm290_vm1, %v878_v53, 0.0 }
 0x44b   : > { %591 = vadd.xlane.f32.xlu2 %v590_v54 }
 0x44d   : > { %v880_v57 = vpop.eup %879 }
 0x44e   : > { %v502_v56 = vpop.xlane.xlu0 %501  ;;  %v392_v59 = vmul.f32 %v880_v57, %v874_v46 }
 0x44f   : > { %881 = vrcp.f32 %v502_v56 }
 0x455   : > { %v882_v61 = vpop.eup %881 }
 0x456   : > { %v504_v62 = vmul.f32 %v882_v61, %v876_v48 }
 0x461   : > { %v394_v58 = vpop.permute.xlu0 %393 }
 0x462   : > { %414 = vmatpush.msrb.mxu2 %v394_v58 }
 0x463   : > { %595 = vrot.lane.b32.xlu2 %v1202_v5, %s1061_s24  ;;  %773 = vmatmul.msk.f32.vlgmr.msrb.gmra.mxu2 %vm290_vm1, %v392_v59 }
 0x464   : > { %526 = vmatpush.msra.mxu2 %v506_v60 }
 0x466   : > { %639 = vmatpush.msrb.mxu2 %v256_v7 }
 0x46b   : > { %778 = vmatmul.msk.f32.vlgmr.msra.gmra.mxu2 %vm290_vm1, %v504_v62 }
 0x4be   : > { %v592_v63 = vpop.xlane.xlu2 %591 }
 0x4bf   : > { %883 = vrcp.f32 %v592_v63 }
 0x4c5   : > { %v884_v0 = vpop.eup %883 }
 0x4c6   : > { %v594_v1 = vmul.f32 %v884_v0, %v878_v53  ;;  %v596_v2 = vpop.permute.xlu2 %595 }
 0x4c7   : > { %616 = vmatpush.msra.mxu0 %v596_v2 }
 0x4c8   : > { %782 = vmatmul.msk.f32.vlgmr.msra.gmra.mxu0 %vm290_vm1, %v594_v1 }
 0x4e6   : > { %v416_v5 = vpop.f32.mrf.mxu2 }
 0x4e7   : > { %774 = vmatmul.msk.f32.vlgmr.msrb.gmra.mxu1 %vm290_vm1, %v416_v5 }
 0x4ee   : > { %v528_v6 = vpop.f32.mrf.mxu2 }
 0x4ef   : > { %779 = vmatmul.msk.f32.vlgmr.msra.gmra.mxu1 %vm290_vm1, %v528_v6 }
 0x545   : > { %v618_v8 = vpop.f32.mrf.mxu0 }
 0x546   : > { %783 = vmatmul.msk.f32.vlgmr.msrb.gmra.mxu2 %vm290_vm1, %v618_v8 }
 0x564   : > { %v439_v9 = vpop.f32.mrf.mxu1 }
 0x565   : > { %v463_v11 = vadd.f32 %v1231_v37, %v439_v9 }
 0x56c   : > { %v551_v10 = vpop.f32.mrf.mxu1 }
 0x56d   : > { %v554_v12 = vadd.f32 %v551_v10, %v463_v11 }
 0x5c9   : > { %v641_v14 = vpop.f32.mrf.mxu2 }
 0x5ca   : > { %v644_v15 = vadd.f32 %v641_v14, %v554_v12 }
 0x5cc   : > { %v648_v16 = vadd.f32 %v868_v13, %v644_v15 }
 0x5ce   : > { %649 = vst.msk [vmem:[%s247_s29] sm:$0xff] %vm258_vm0, %v648_v16 }
 0x5cf   : > { %1002 = shalt.err (!%p999_p9)
}
 0x5d0   : > { %798 = dma.vmem_to_hbm [thread:$0]  (%p1156_p4), %s664_s30, 128, %s666_s5, %s651_s22  }
 0x5d1 PF: > { %s677_s14 = sand.u32 1, %s1033_s15   ;;  %p1297_p10 = scmp.ge.s32.totalorder %s1045_s18, 2 }
 0x5d2   : > { %s678_s25 = scalar_lea.sflag [#allocation4], %s677_s14 }
 0x5d3   : > { %p812_p13 = pnand %p1297_p10, %p1160_p6 }
 0x5d5   : > { %p813_p11 = pneg %p812_p13 }
 0x5d7   : > { %1028 = dma.done.wait (%p813_p11), %s678_s25, 128  }
 0x5d8   : > { %1030 = vsyncadd (%p813_p11), %s678_s25, 4294967168  ;;  %p18_p0 = scmp.ge.s32.totalorder %s1130_s8, 4   ;;  %s1298_s15 = smov %s1037_s16 }
 0x5d9   : > { %s1299_s16 = smov %s1041_s17  ;;  %s1300_s17 = smov %s1141_s11 }
 0x5da   : > { %s1301_s18 = smov %s1130_s8  ;;  %20 = sbr.rel (!%p18_p0) target bundleno = 6 (0x6), region = 89 }
 0x5df   :  { %684 = vsyncpa [#allocation3], 1 }
 0x5e0   :  { %686 = vsyncpa [#allocation3 + $0x1], 1 }
 0x5e1   :  { %687 = vsyncpa [#allocation6], 1 }
 0x5e2   :  { %688 = vsyncpa [#allocation4], 1 }
 0x5e3   :  { %690 = vsyncpa [#allocation4 + $0x1], 1 }

</bundles_post_ra>
